<compile_context>
chip_gen: v5e
topology: v5e:2x2
jax: 0.10.0
libtpu: 0.0.40
codegen_flags: <defaults>
</compile_context>

<pallas_src>
import functools

import jax
import jax.numpy as jnp
from jax.experimental import pallas as pl
from jax.experimental.pallas import tpu as pltpu


def _round_up(x, m):
    return (x + m - 1) // m * m


# --------------------------------------------------------------------------- #
# Kernel
# --------------------------------------------------------------------------- #
def actor_critic_kernel(action_ref, state_ref,
                        w1_ref, b1_ref, w2_ref, b2_ref, w3_ref, b3_ref,
                        out_ref, *, num_actions):
    """One batch tile (feature-major; batch on the lane axis).

    action_ref : [1,  TB]   int32   taken actions
    state_ref  : [Sp, TB]   f32     states (transposed, zero-padded rows)
    w1_ref     : [2H, Sp]   bf16    [actor_w1 ; critic_w1]
    b1_ref     : [2H, 1]    f32
    w2_ref     : [2H, 2H]   bf16    blockdiag(actor_w2, critic_w2)
    b2_ref     : [2H, 1]    f32
    w3_ref     : [Hr, 2H]   bf16    rows 0..A-1 actor head, row A critic head
    b3_ref     : [Hr, 1]    f32
    out_ref    : [Ro, TB]   f32     rows = probs(A) | logprob | entropy | value | 0
    """
    x = state_ref[...].astype(jnp.bfloat16)                               # [Sp, TB]

    # Fused trunk: 3 MXU matmuls, bf16 operands, f32 accumulation.
    h1 = jnp.tanh(jnp.dot(w1_ref[...], x,
                          preferred_element_type=jnp.float32) + b1_ref[...])
    h2 = jnp.tanh(jnp.dot(w2_ref[...], h1.astype(jnp.bfloat16),
                          preferred_element_type=jnp.float32) + b2_ref[...])
    y = jnp.dot(w3_ref[...], h2.astype(jnp.bfloat16),
                preferred_element_type=jnp.float32) + b3_ref[...]         # [Hr, TB]

    logits = y[:num_actions, :]                                           # [A, TB]
    value = y[num_actions:num_actions + 1, :]                             # [1, TB]

    # Numerically-stable softmax over the action rows (f32, EUP reciprocal).
    m = jnp.max(logits, axis=0, keepdims=True)                            # [1, TB]
    z = logits - m
    e = jnp.exp(z)
    s = jnp.sum(e, axis=0, keepdims=True)
    log_s = jnp.log(s)
    probs = e * pl.reciprocal(s, approx=True)                             # [A, TB]
    logp = z - log_s                                                      # [A, TB]

    # Categorical.log_prob(action): iota==action mask (no one-hot input array).
    row = jax.lax.broadcasted_iota(jnp.int32, logits.shape, 0)            # [A, TB]
    logprob = jnp.sum(jnp.where(row == action_ref[...], logp, 0.0),
                      axis=0, keepdims=True)                              # [1, TB]

    # Categorical.entropy(): -sum p*logp = log(s) - sum p*z   (reuses log_s).
    entropy = log_s - jnp.sum(probs * z, axis=0, keepdims=True)           # [1, TB]

    out_ref[0:num_actions, :] = probs
    out_ref[num_actions:num_actions + 1, :] = logprob
    out_ref[num_actions + 1:num_actions + 2, :] = entropy
    out_ref[num_actions + 2:num_actions + 3, :] = value
    pad_rows = out_ref.shape[0] - (num_actions + 3)
    if pad_rows > 0:  # static
        out_ref[num_actions + 3:, :] = jnp.zeros(
            (pad_rows, out_ref.shape[1]), jnp.float32)


# --------------------------------------------------------------------------- #
# Parameters
# --------------------------------------------------------------------------- #
def init_params(key, state_dim, action_dim, n_latent_var):
    """PyTorch-layout params ([out, in] weights, [out] biases), default Linear init."""
    def linear(k, fan_in, fan_out):
        kw, kb = jax.random.split(k)
        bound = 1.0 / jnp.sqrt(fan_in)
        w = jax.random.uniform(kw, (fan_out, fan_in), jnp.float32, -bound, bound)
        b = jax.random.uniform(kb, (fan_out,), jnp.float32, -bound, bound)
        return w, b

    ks = jax.random.split(key, 6)
    actor = (*linear(ks[0], state_dim, n_latent_var),
             *linear(ks[1], n_latent_var, n_latent_var),
             *linear(ks[2], n_latent_var, action_dim))
    critic = (*linear(ks[3], state_dim, n_latent_var),
              *linear(ks[4], n_latent_var, n_latent_var),
              *linear(ks[5], n_latent_var, 1))
    return actor, critic


def fuse_params(actor, critic, matmul_dtype=jnp.bfloat16):
    """Fuse actor + critic heads into one 128-wide trunk (bf16 weights, f32 biases)."""
    aw1, ab1, aw2, ab2, aw3, ab3 = actor
    vw1, vb1, vw2, vb2, vw3, vb3 = critic
    hidden = aw1.shape[0]
    state_dim = aw1.shape[1]
    num_actions = aw3.shape[0]

    s_pad = _round_up(state_dim, 8)
    head_rows = _round_up(num_actions + 1, 8)

    # Layer 1: [2H, Sp] — actor rows on top, critic rows below; padded state cols zero.
    w1 = jnp.zeros((2 * hidden, s_pad), jnp.float32)
    w1 = w1.at[:hidden, :state_dim].set(aw1).at[hidden:, :state_dim].set(vw1)
    b1 = jnp.concatenate([ab1, vb1])[:, None]

    # Layer 2: block-diagonal [2H, 2H] (= 128x128 for hidden=64).
    w2 = jnp.zeros((2 * hidden, 2 * hidden), jnp.float32)
    w2 = w2.at[:hidden, :hidden].set(aw2).at[hidden:, hidden:].set(vw2)
    b2 = jnp.concatenate([ab2, vb2])[:, None]

    # Layer 3: rows 0..A-1 -> actor logits (left half), row A -> critic value (right half).
    w3 = jnp.zeros((head_rows, 2 * hidden), jnp.float32)
    w3 = w3.at[:num_actions, :hidden].set(aw3)
    w3 = w3.at[num_actions:num_actions + 1, hidden:].set(vw3)
    b3 = jnp.zeros((head_rows, 1), jnp.float32)
    b3 = b3.at[:num_actions, 0].set(ab3).at[num_actions, 0].set(vb3[0])

    return dict(w1=w1.astype(matmul_dtype), b1=b1,
                w2=w2.astype(matmul_dtype), b2=b2,
                w3=w3.astype(matmul_dtype), b3=b3,
                state_dim=state_dim, num_actions=num_actions)


# --------------------------------------------------------------------------- #
# Wrapper (mirrors ActorCritic.evaluate)
# --------------------------------------------------------------------------- #
def evaluate(state, action, fused, *, block_b=128):
    """Returns (action_logprobs, state_value, dist_entropy, action_probs)."""
    w1, b1 = fused["w1"], fused["b1"]
    w2, b2 = fused["w2"], fused["b2"]
    w3, b3 = fused["w3"], fused["b3"]
    num_actions = fused["num_actions"]

    batch, state_dim = state.shape
    s_pad = w1.shape[1]
    out_rows = _round_up(num_actions + 3, 8)
    padded_b = pl.cdiv(batch, block_b) * block_b

    # Feature-major, lane-padded inputs (transpose + pad once in JAX).
    x = jnp.zeros((s_pad, padded_b), jnp.float32).at[:state_dim, :batch].set(state.T)
    act = jnp.zeros((1, padded_b), jnp.int32).at[:, :batch].set(
        action.astype(jnp.int32)[None, :])

    def tile_spec(rows):
        return pl.BlockSpec((rows, block_b), lambda i: (0, i))

    def resident_spec(arr):  # weights: same block every grid step -> stays in VMEM
        return pl.BlockSpec(arr.shape, lambda i: (0, 0))

    kernel = functools.partial(actor_critic_kernel, num_actions=num_actions)

    out = pl.pallas_call(
        kernel,
        out_shape=jax.ShapeDtypeStruct((out_rows, padded_b), jnp.float32),
        grid=(padded_b // block_b,),
        in_specs=[
            tile_spec(1),             # action indices
            tile_spec(s_pad),         # states
            resident_spec(w1), resident_spec(b1),
            resident_spec(w2), resident_spec(b2),
            resident_spec(w3), resident_spec(b3),
        ],
        out_specs=tile_spec(out_rows),
        compiler_params=pltpu.CompilerParams(
            dimension_semantics=("parallel",)),
    )(act, x, w1, b1, w2, b2, w3, b3)

    probs = out[:num_actions, :batch].T            # [B, A]
    logprob = out[num_actions, :batch]             # [B]
    entropy = out[num_actions + 1, :batch]         # [B]
    value = out[num_actions + 2, :batch]           # [B]  (== torch.squeeze(state_value))
    return logprob, value, entropy, probs


# --------------------------------------------------------------------------- #
# Pure-JAX reference (exactly mirrors the PyTorch module, f32 everywhere)
# --------------------------------------------------------------------------- #
def reference_evaluate(state, action, actor, critic):
    def mlp(x, w1, b1, w2, b2, w3, b3):
        h = jnp.tanh(x @ w1.T + b1)
        h = jnp.tanh(h @ w2.T + b2)
        return h @ w3.T + b3

    logits = mlp(state, *actor)
    logp = jax.nn.log_softmax(logits, axis=-1)
    probs = jnp.exp(logp)
    logprob = jnp.take_along_axis(logp, action[:, None].astype(jnp.int32), axis=-1)[:, 0]
    entropy = -jnp.sum(probs * logp, axis=-1)
    value = mlp(state, *critic)[:, 0]
    return logprob, value, entropy, probs


# TODO(synk): ActorCritic.act() samples from Categorical (stateful torch RNG);
# sampling is done outside the kernel (e.g. gumbel/argmax over returned probs).

if __name__ == "__main__":
    # CartPole-like dims: state_dim=4, action_dim=2, hidden=64, batch=8
    state_dim, action_dim, n_latent_var, batch = 4, 2, 64, 8

    key = jax.random.PRNGKey(0)
    k_params, k_state, k_action = jax.random.split(key, 3)

    actor, critic = init_params(k_params, state_dim, action_dim, n_latent_var)
    fused = fuse_params(actor, critic)

    state = jax.random.normal(k_state, (batch, state_dim), dtype=jnp.float32)
    action = jax.random.randint(k_action, (batch,), 0, action_dim)

    logprob, value, entropy, probs = evaluate(state, action, fused)
    jax.block_until_ready((logprob, value, entropy, probs))

    # Sanity (tolerances loosened for bf16 MXU operands + approx EUP reciprocal).
    assert jnp.allclose(jnp.sum(probs, axis=-1), 1.0, atol=1e-2)
    assert bool(jnp.all(entropy >= -1e-3))

    r_logprob, r_value, r_entropy, r_probs = reference_evaluate(state, action, actor, critic)
    assert jnp.allclose(probs, r_probs, atol=5e-2)
    assert jnp.allclose(logprob, r_logprob, atol=5e-2)
    assert jnp.allclose(entropy, r_entropy, atol=5e-2)
    assert jnp.allclose(value, r_value, atol=5e-2)

    print("KERNEL_OK")
</pallas_src>

<mosaic_0001>
module attributes {stable_mosaic.version = 11 : i64} {
  func.func @actor_critic_kernel(%arg0: i32, %arg1: memref<1x128xi32, #tpu.memory_space<vmem>>, %arg2: memref<8x128xf32, #tpu.memory_space<vmem>>, %arg3: memref<128x8xbf16, #tpu.memory_space<vmem>>, %arg4: memref<128x1xf32, #tpu.memory_space<vmem>>, %arg5: memref<128x128xbf16, #tpu.memory_space<vmem>>, %arg6: memref<128x1xf32, #tpu.memory_space<vmem>>, %arg7: memref<8x128xbf16, #tpu.memory_space<vmem>>, %arg8: memref<8x1xf32, #tpu.memory_space<vmem>>, %arg9: memref<8x128xf32, #tpu.memory_space<vmem>>) attributes {dimension_semantics = [#tpu.dimension_semantics<parallel>], iteration_bounds = array<i64: 1>, scalar_prefetch = 0 : i64, scratch_operands = 0 : i64, tpu.core_type = #tpu.core_type<tc>, window_params = [{transform_indices = @transform_0, window_bounds = array<i64: 1, 128>}, {transform_indices = @transform_1, window_bounds = array<i64: 8, 128>}, {pipeline_mode = #tpu.pipeline_mode<synchronous>, transform_indices = @transform_2, window_bounds = array<i64: 128, 8>}, {pipeline_mode = #tpu.pipeline_mode<synchronous>, transform_indices = @transform_3, window_bounds = array<i64: 128, 1>}, {pipeline_mode = #tpu.pipeline_mode<synchronous>, transform_indices = @transform_4, window_bounds = array<i64: 128, 128>}, {pipeline_mode = #tpu.pipeline_mode<synchronous>, transform_indices = @transform_5, window_bounds = array<i64: 128, 1>}, {pipeline_mode = #tpu.pipeline_mode<synchronous>, transform_indices = @transform_6, window_bounds = array<i64: 8, 128>}, {pipeline_mode = #tpu.pipeline_mode<synchronous>, transform_indices = @transform_7, window_bounds = array<i64: 8, 1>}, {transform_indices = @transform_8, window_bounds = array<i64: 8, 128>}]} {
    %c0 = arith.constant 0 : index
    %c0_0 = arith.constant 0 : index
    %0 = vector.load %arg2[%c0, %c0_0] : memref<8x128xf32, #tpu.memory_space<vmem>>, vector<8x128xf32>
    %1 = arith.truncf %0 : vector<8x128xf32> to vector<8x128xbf16>
    %c0_1 = arith.constant 0 : index
    %c0_2 = arith.constant 0 : index
    %2 = vector.load %arg3[%c0_1, %c0_2] : memref<128x8xbf16, #tpu.memory_space<vmem>>, vector<128x8xbf16>
    %cst = arith.constant dense<0.000000e+00> : vector<128x128xf32>
    %3 = tpu.matmul %2, %1, %cst {dimension_numbers = #tpu.dot_dimension_numbers<[1], [0], [0], [1], [0, 0, 1, 1], [], []>} : vector<128x8xbf16>, vector<8x128xbf16>, vector<128x128xf32> -> vector<128x128xf32>
    %c0_3 = arith.constant 0 : index
    %c0_4 = arith.constant 0 : index
    %4 = vector.load %arg4[%c0_3, %c0_4] : memref<128x1xf32, #tpu.memory_space<vmem>>, vector<128x1xf32>
    %5 = vector.broadcast %4 : vector<128x1xf32> to vector<128x128xf32>
    %6 = arith.addf %3, %5 : vector<128x128xf32>
    %7 = math.tanh %6 : vector<128x128xf32>
    %c0_5 = arith.constant 0 : index
    %c0_6 = arith.constant 0 : index
    %8 = vector.load %arg5[%c0_5, %c0_6] : memref<128x128xbf16, #tpu.memory_space<vmem>>, vector<128x128xbf16>
    %9 = arith.truncf %7 : vector<128x128xf32> to vector<128x128xbf16>
    %cst_7 = arith.constant dense<0.000000e+00> : vector<128x128xf32>
    %10 = tpu.matmul %8, %9, %cst_7 {dimension_numbers = #tpu.dot_dimension_numbers<[1], [0], [0], [1], [0, 0, 1, 1], [], []>} : vector<128x128xbf16>, vector<128x128xbf16>, vector<128x128xf32> -> vector<128x128xf32>
    %c0_8 = arith.constant 0 : index
    %c0_9 = arith.constant 0 : index
    %11 = vector.load %arg6[%c0_8, %c0_9] : memref<128x1xf32, #tpu.memory_space<vmem>>, vector<128x1xf32>
    %12 = vector.broadcast %11 : vector<128x1xf32> to vector<128x128xf32>
    %13 = arith.addf %10, %12 : vector<128x128xf32>
    %14 = math.tanh %13 : vector<128x128xf32>
    %c0_10 = arith.constant 0 : index
    %c0_11 = arith.constant 0 : index
    %15 = vector.load %arg7[%c0_10, %c0_11] : memref<8x128xbf16, #tpu.memory_space<vmem>>, vector<8x128xbf16>
    %16 = arith.truncf %14 : vector<128x128xf32> to vector<128x128xbf16>
    %cst_12 = arith.constant dense<0.000000e+00> : vector<8x128xf32>
    %17 = tpu.matmul %15, %16, %cst_12 {dimension_numbers = #tpu.dot_dimension_numbers<[1], [0], [0], [1], [0, 0, 1, 1], [], []>} : vector<8x128xbf16>, vector<128x128xbf16>, vector<8x128xf32> -> vector<8x128xf32>
    %c0_13 = arith.constant 0 : index
    %c0_14 = arith.constant 0 : index
    %18 = vector.load %arg8[%c0_13, %c0_14] : memref<8x1xf32, #tpu.memory_space<vmem>>, vector<8x1xf32>
    %19 = vector.broadcast %18 : vector<8x1xf32> to vector<8x128xf32>
    %20 = arith.addf %17, %19 : vector<8x128xf32>
    %21 = vector.extract_strided_slice %20 {offsets = [0, 0], sizes = [2, 128], strides = [1, 1]} : vector<8x128xf32> to vector<2x128xf32>
    %22 = vector.extract_strided_slice %20 {offsets = [2, 0], sizes = [1, 128], strides = [1, 1]} : vector<8x128xf32> to vector<1x128xf32>
    %cst_15 = arith.constant dense<0xFF800000> : vector<128xf32>
    %23 = vector.multi_reduction <maximumf>, %21, %cst_15 [0] : vector<2x128xf32> to vector<128xf32>
    %24 = vector.shape_cast %23 : vector<128xf32> to vector<1x128xf32>
    %25 = vector.broadcast %24 : vector<1x128xf32> to vector<2x128xf32>
    %26 = arith.subf %21, %25 : vector<2x128xf32>
    %27 = math.exp %26 : vector<2x128xf32>
    %cst_16 = arith.constant dense<0.000000e+00> : vector<128xf32>
    %28 = vector.multi_reduction <add>, %27, %cst_16 [0] : vector<2x128xf32> to vector<128xf32>
    %29 = vector.shape_cast %28 : vector<128xf32> to vector<1x128xf32>
    %30 = math.log %29 : vector<1x128xf32>
    %31 = tpu.reciprocal %29 {approx = true} : vector<1x128xf32> -> vector<1x128xf32>
    %32 = vector.broadcast %31 : vector<1x128xf32> to vector<2x128xf32>
    %33 = arith.mulf %27, %32 : vector<2x128xf32>
    %34 = vector.broadcast %30 : vector<1x128xf32> to vector<2x128xf32>
    %35 = arith.subf %26, %34 : vector<2x128xf32>
    %36 = tpu.iota {dimensions = array<i32: 0>} : vector<2x128xi32>
    %c0_17 = arith.constant 0 : index
    %c0_18 = arith.constant 0 : index
    %37 = vector.load %arg1[%c0_17, %c0_18] : memref<1x128xi32, #tpu.memory_space<vmem>>, vector<1x128xi32>
    %38 = vector.broadcast %37 : vector<1x128xi32> to vector<2x128xi32>
    %39 = arith.cmpi eq, %36, %38 : vector<2x128xi32>
    %cst_19 = arith.constant 0.000000e+00 : f32
    %40 = vector.broadcast %cst_19 : f32 to vector<2x128xf32>
    %41 = arith.select %39, %35, %40 : vector<2x128xi1>, vector<2x128xf32>
    %cst_20 = arith.constant dense<0.000000e+00> : vector<128xf32>
    %42 = vector.multi_reduction <add>, %41, %cst_20 [0] : vector<2x128xf32> to vector<128xf32>
    %43 = vector.shape_cast %42 : vector<128xf32> to vector<1x128xf32>
    %44 = arith.mulf %33, %26 : vector<2x128xf32>
    %cst_21 = arith.constant dense<0.000000e+00> : vector<128xf32>
    %45 = vector.multi_reduction <add>, %44, %cst_21 [0] : vector<2x128xf32> to vector<128xf32>
    %46 = vector.shape_cast %45 : vector<128xf32> to vector<1x128xf32>
    %47 = arith.subf %30, %46 : vector<1x128xf32>
    %c0_22 = arith.constant 0 : index
    %c0_23 = arith.constant 0 : index
    %48 = vector.load %arg9[%c0_22, %c0_23] : memref<8x128xf32, #tpu.memory_space<vmem>>, vector<2x128xf32>
    tpu.vector_store %arg9[%c0_22, %c0_23], %33 {strides = array<i32>} : memref<8x128xf32, #tpu.memory_space<vmem>>, vector<2x128xf32>,
    %c2 = arith.constant 2 : index
    %c0_24 = arith.constant 0 : index
    %49 = vector.load %arg9[%c2, %c0_24] : memref<8x128xf32, #tpu.memory_space<vmem>>, vector<1x128xf32>
    tpu.vector_store %arg9[%c2, %c0_24], %43 {strides = array<i32>} : memref<8x128xf32, #tpu.memory_space<vmem>>, vector<1x128xf32>,
    %c3 = arith.constant 3 : index
    %c0_25 = arith.constant 0 : index
    %50 = vector.load %arg9[%c3, %c0_25] : memref<8x128xf32, #tpu.memory_space<vmem>>, vector<1x128xf32>
    tpu.vector_store %arg9[%c3, %c0_25], %47 {strides = array<i32>} : memref<8x128xf32, #tpu.memory_space<vmem>>, vector<1x128xf32>,
    %c4 = arith.constant 4 : index
    %c0_26 = arith.constant 0 : index
    %51 = vector.load %arg9[%c4, %c0_26] : memref<8x128xf32, #tpu.memory_space<vmem>>, vector<1x128xf32>
    tpu.vector_store %arg9[%c4, %c0_26], %22 {strides = array<i32>} : memref<8x128xf32, #tpu.memory_space<vmem>>, vector<1x128xf32>,
    %cst_27 = arith.constant 0.000000e+00 : f32
    %52 = vector.broadcast %cst_27 : f32 to vector<3x128xf32>
    %c5 = arith.constant 5 : index
    %c0_28 = arith.constant 0 : index
    %53 = vector.load %arg9[%c5, %c0_28] : memref<8x128xf32, #tpu.memory_space<vmem>>, vector<3x128xf32>
    tpu.vector_store %arg9[%c5, %c0_28], %52 {strides = array<i32>} : memref<8x128xf32, #tpu.memory_space<vmem>>, vector<3x128xf32>,
    return
  }
  func.func @transform_0(%arg0: i32) -> (i32, i32) {
    %c0_i32 = arith.constant 0 : i32
    %c0_i32_0 = arith.constant 0 : i32
    return %c0_i32, %arg0 : i32, i32
  }
  func.func @transform_1(%arg0: i32) -> (i32, i32) {
    %c0_i32 = arith.constant 0 : i32
    %c0_i32_0 = arith.constant 0 : i32
    return %c0_i32, %arg0 : i32, i32
  }
  func.func @transform_2(%arg0: i32) -> (i32, i32) {
    %c0_i32 = arith.constant 0 : i32
    %c0_i32_0 = arith.constant 0 : i32
    %c0_i32_1 = arith.constant 0 : i32
    return %c0_i32, %c0_i32_0 : i32, i32
  }
  func.func @transform_3(%arg0: i32) -> (i32, i32) {
    %c0_i32 = arith.constant 0 : i32
    %c0_i32_0 = arith.constant 0 : i32
    %c0_i32_1 = arith.constant 0 : i32
    return %c0_i32, %c0_i32_0 : i32, i32
  }
  func.func @transform_4(%arg0: i32) -> (i32, i32) {
    %c0_i32 = arith.constant 0 : i32
    %c0_i32_0 = arith.constant 0 : i32
    %c0_i32_1 = arith.constant 0 : i32
    return %c0_i32, %c0_i32_0 : i32, i32
  }
  func.func @transform_5(%arg0: i32) -> (i32, i32) {
    %c0_i32 = arith.constant 0 : i32
    %c0_i32_0 = arith.constant 0 : i32
    %c0_i32_1 = arith.constant 0 : i32
    return %c0_i32, %c0_i32_0 : i32, i32
  }
  func.func @transform_6(%arg0: i32) -> (i32, i32) {
    %c0_i32 = arith.constant 0 : i32
    %c0_i32_0 = arith.constant 0 : i32
    %c0_i32_1 = arith.constant 0 : i32
    return %c0_i32, %c0_i32_0 : i32, i32
  }
  func.func @transform_7(%arg0: i32) -> (i32, i32) {
    %c0_i32 = arith.constant 0 : i32
    %c0_i32_0 = arith.constant 0 : i32
    %c0_i32_1 = arith.constant 0 : i32
    return %c0_i32, %c0_i32_0 : i32, i32
  }
  func.func @transform_8(%arg0: i32) -> (i32, i32) {
    %c0_i32 = arith.constant 0 : i32
    %c0_i32_0 = arith.constant 0 : i32
    return %c0_i32, %arg0 : i32, i32
  }
}

</mosaic_0001>

<bundles_post_ra>
// kernel: tpu_custom_call.1
= control target key start
LH: loop header
LB: loop body
LE: loop exit
PB: predicated region body
PF: predicated region fallthrough
CT: control target
= control target key end

     0   :  { %vm210_vm0 = vcmask 1043456   ;;  %v806_v2 = vmov 0   ;;  %vm185_vm1 = vcmask 64512   ;;  %s1049_s0 = inlined_call_operand.vmem [shape: s32[1,128], index: 0, kind: input, shape index: {}]   ;;  %s1050_s1 = inlined_call_operand.vmem [shape: f32[8,128], index: 1, kind: input, shape index: {}]   ;;  %s1051_s2 = inlined_call_operand.vmem [shape: bf16[128,8], index: 2, kind: input, shape index: {}]   ;;  %s1052_s3 = inlined_call_operand.vmem [shape: f32[128,1], index: 3, kind: input, shape index: {}]   ;;  %s1053_s4 = inlined_call_operand.vmem [shape: bf16[128,128], index: 4, kind: input, shape index: {}]   ;;  %s1054_s5 = inlined_call_operand.vmem [shape: f32[128,1], index: 5, kind: input, shape index: {}]   ;;  %s1055_s6 = inlined_call_operand.vmem [shape: bf16[8,128], index: 6, kind: input, shape index: {}]   ;;  %s1056_s7 = inlined_call_operand.vmem [shape: f32[8,1], index: 7, kind: input, shape index: {}]   ;;  %s1057_s8 = inlined_call_operand.hbm [shape: f32[8,128], index: 8, kind: output, shape index: {}]  }
   0x1   :  { %v63_v0 = vld [vmem:[%s1052_s3 + $0x70] sm:$0xff]  ;;  %v31_v1 = vld [vmem:[%s1050_s1] sm:$0xff]  ;;  %706 = vset.pattern.permute.xlu0 %v806_v2  ;;  %708 = vset.pattern.permute.xlu2 %v806_v2 }
   0x2   :  { %v32_v3 = vpack.c.bf16 %v31_v1, %v31_v1  ;;  %v61_v4 = vld [vmem:[%s1052_s3 + $0x60] sm:$0xff]  ;;  %v59_v5 = vld [vmem:[%s1052_s3 + $0x50] sm:$0xff]  ;;  %137 = vperm.xlu0 %706, %v63_v0   ;;  %707 = vset.pattern.permute.xlu1 %v806_v2 }
   0x3   :  { %v678_v7 = vld [vmem:[%s1051_s2] sm:$0xff]  ;;  %127 = vperm.xlu1 %707, %v61_v4   ;;  %117 = vperm.xlu2 %708, %v59_v5   ;;  %v684_v8 = vld [vmem:[%s1051_s2 + $0x30] sm:$0xff] }
   0x4   :  { %v212_v6 = vsel %vm210_vm0, %v32_v3, 0 }
   0x5   :  { %221 = vmatpush.bf16.msra.mxu0 %v212_v6  ;;  %694 = vmatpush.bf16.msra.mxu2 %v212_v6 }
   0x6   :  { %13 = vsyncpa [#allocation3], 0  ;;  %v64_v9 = vld [vmem:[%s1052_s3 + $0x78] sm:$0xff]  ;;  %v62_v10 = vld [vmem:[%s1052_s3 + $0x68] sm:$0xff]  ;;  %vm540_vm2 = vcmask 1041408   ;;  %s597_s12 = sshll.u32 %s1057_s8, 4  ;;  %s598_s12 = int_to_ptr.hbm [resolvable:$true] %s597_s12 }
   0x7   :  { %v60_v11 = vld [vmem:[%s1052_s3 + $0x58] sm:$0xff]  ;;  %v57_v12 = vld [vmem:[%s1052_s3 + $0x40] sm:$0xff]  ;;  %v58_v13 = vld [vmem:[%s1052_s3 + $0x48] sm:$0xff] }
   0x8   :  { %638 = vmatmul.msk.bf16.vlgmr.msra.gmra.mxu0 %vm185_vm1, %v678_v7  ;;  %644 = vmatmul.msk.bf16.vlgmr.msra.gmra.mxu2 %vm185_vm1, %v684_v8  ;;  %v55_v14 = vld [vmem:[%s1052_s3 + $0x30] sm:$0xff]  ;;  %v679_v15 = vld [vmem:[%s1051_s2 + $0x8] sm:$0xff]  ;;  %v685_v16 = vld [vmem:[%s1051_s2 + $0x38] sm:$0xff] }
   0x9   :  { %v56_v17 = vld [vmem:[%s1052_s3 + $0x38] sm:$0xff]  ;;  %v54_v18 = vld [vmem:[%s1052_s3 + $0x28] sm:$0xff]  ;;  %v53_v19 = vld [vmem:[%s1052_s3 + $0x20] sm:$0xff] }
   0xa   :  { %142 = vperm.xlu0 %706, %v64_v9   ;;  %v51_v20 = vld [vmem:[%s1052_s3 + $0x10] sm:$0xff]  ;;  %v52_v21 = vld [vmem:[%s1052_s3 + $0x18] sm:$0xff]  ;;  %v49_v22 = vld [vmem:[%s1052_s3] sm:$0xff] }
   0xb   :  { %132 = vperm.xlu1 %707, %v62_v10   ;;  %122 = vperm.xlu2 %708, %v60_v11   ;;  %v680_v23 = vld [vmem:[%s1051_s2 + $0x10] sm:$0xff]  ;;  %v50_v24 = vld [vmem:[%s1052_s3 + $0x8] sm:$0xff]  ;;  %v318_v26 = vld [vmem:[%s1054_s5 + $0x78] sm:$0xff] }
   0xc   :  { %v317_v25 = vld [vmem:[%s1054_s5 + $0x70] sm:$0xff]  ;;  %v315_v27 = vld [vmem:[%s1054_s5 + $0x60] sm:$0xff]  ;;  %v316_v28 = vld [vmem:[%s1054_s5 + $0x68] sm:$0xff] }
   0xd   :  { %v313_v29 = vld [vmem:[%s1054_s5 + $0x50] sm:$0xff]  ;;  %v681_v30 = vld [vmem:[%s1051_s2 + $0x18] sm:$0xff]  ;;  %v311_v32 = vld [vmem:[%s1054_s5 + $0x40] sm:$0xff] }
   0xe   :  { %v314_v31 = vld [vmem:[%s1054_s5 + $0x58] sm:$0xff]  ;;  %v312_v33 = vld [vmem:[%s1054_s5 + $0x48] sm:$0xff]  ;;  %v309_v34 = vld [vmem:[%s1054_s5 + $0x30] sm:$0xff] }
   0xf   :  { %v310_v35 = vld [vmem:[%s1054_s5 + $0x38] sm:$0xff]  ;;  %v307_v36 = vld [vmem:[%s1054_s5 + $0x20] sm:$0xff]  ;;  %v308_v38 = vld [vmem:[%s1054_s5 + $0x28] sm:$0xff] }
  0x10   :  { %v682_v37 = vld [vmem:[%s1051_s2 + $0x20] sm:$0xff]  ;;  %v305_v39 = vld [vmem:[%s1054_s5 + $0x10] sm:$0xff]  ;;  %v306_v40 = vld [vmem:[%s1054_s5 + $0x18] sm:$0xff] }
  0x11   :  { %v303_v41 = vld [vmem:[%s1054_s5] sm:$0xff]  ;;  %v304_v42 = vld [vmem:[%s1054_s5 + $0x8] sm:$0xff] }
  0x12   :  { %107 = vperm.xlu0 %706, %v57_v12   ;;  %v683_v43 = vld [vmem:[%s1051_s2 + $0x28] sm:$0xff]  ;;  %v521_v44 = vld [vmem:[%s1056_s7] sm:$0xff] }
  0x13   :  { %112 = vperm.xlu1 %707, %v58_v13   ;;  %97 = vperm.xlu2 %708, %v55_v14  }
  0x18   :  { %639 = vmatmul.msk.bf16.gmra.mxu0 %vm185_vm1, %v679_v15  ;;  %645 = vmatmul.msk.bf16.gmra.mxu2 %vm185_vm1, %v685_v16 }
  0x1a   :  { %102 = vperm.xlu0 %706, %v56_v17  }
  0x1b   :  { %92 = vperm.xlu2 %708, %v54_v18   ;;  %87 = vperm.xlu1 %707, %v53_v19  }
  0x22   :  { %77 = vperm.xlu0 %706, %v51_v20  }
  0x23   :  { %82 = vperm.xlu1 %707, %v52_v21   ;;  %67 = vperm.xlu2 %708, %v49_v22  }
  0x28   :  { %640 = vmatmul.msk.bf16.gmra.mxu0 %vm185_vm1, %v680_v23 }
  0x2a   :  { %72 = vperm.xlu0 %706, %v50_v24  }
  0x2b   :  { %391 = vperm.xlu1 %707, %v317_v25   ;;  %396 = vperm.xlu2 %708, %v318_v26  }
  0x32   :  { %381 = vperm.xlu0 %706, %v315_v27  }
  0x33   :  { %386 = vperm.xlu1 %707, %v316_v28   ;;  %371 = vperm.xlu2 %708, %v313_v29  }
  0x38   :  { %641 = vmatmul.msk.bf16.gmra.mxu0 %vm185_vm1, %v681_v30 }
  0x3a   :  { %376 = vperm.xlu0 %706, %v314_v31  }
  0x3b   :  { %361 = vperm.xlu1 %707, %v311_v32   ;;  %366 = vperm.xlu2 %708, %v312_v33  }
  0x42   :  { %351 = vperm.xlu0 %706, %v309_v34  }
  0x43   :  { %356 = vperm.xlu1 %707, %v310_v35   ;;  %341 = vperm.xlu2 %708, %v307_v36  }
  0x48   :  { %642 = vmatmul.msk.bf16.gmra.mxu0 %vm185_vm1, %v682_v37 }
  0x4a   :  { %346 = vperm.xlu0 %706, %v308_v38  }
  0x4b   :  { %331 = vperm.xlu1 %707, %v305_v39   ;;  %336 = vperm.xlu2 %708, %v306_v40  }
  0x52   :  { %321 = vperm.xlu0 %706, %v303_v41  }
  0x53   :  { %326 = vperm.xlu1 %707, %v304_v42   ;;  %524 = vperm.xlu2 %708, %v521_v44  }
  0x58   :  { %643 = vmatmul.msk.bf16.gmra.mxu0 %vm185_vm1, %v683_v43 }
  0x5d   :  { %v988_v45 = vpop.permute.xlu2 %117 }
  0x65   :  { %v990_v48 = vpop.permute.xlu2 %122 }
  0x6d   :  { %v992_v51 = vpop.permute.xlu2 %97 }
  0x74   :  { %v138_v46 = vpop.permute.xlu0 %137 }
  0x75   :  { %v128_v47 = vpop.permute.xlu1 %127  ;;  %v994_v56 = vpop.permute.xlu2 %92 }
  0x7c   :  { %v143_v49 = vpop.permute.xlu0 %142 }
  0x7d   :  { %v133_v50 = vpop.permute.xlu1 %132  ;;  %v68_v63 = vpop.permute.xlu2 %67 }
  0x84   :  { %v108_v52 = vpop.permute.xlu0 %107 }
  0x85   :  { %v223_v53 = vpop.f32.mrf.mxu0  ;;  %v113_v54 = vpop.permute.xlu1 %112 }
  0x86   :  { %v224_v0 = vadd.f32 %v223_v53, %v68_v63  ;;  %v686_v53 = vld [vmem:[%s1053_s4] sm:$0xff] }
  0x88   :  { %710 = vtanh.f32 %v224_v0 }
  0x8b   :  { %v253_v55 = vpop.f32.mrf.mxu2 }
  0x8c   :  { %v103_v57 = vpop.permute.xlu0 %102  ;;  %v254_v8 = vadd.f32 %v253_v55, %v128_v47  ;;  %v687_v55 = vld [vmem:[%s1053_s4 + $0x8] sm:$0xff] }
  0x8d   :  { %v225_v58 = vpop.f32.mrf.mxu0  ;;  %v996_v59 = vpop.permute.xlu1 %87 }
  0x8e   :  { %v711_v12 = vpop.eup %710 }
  0x93   :  { %v255_v60 = vpop.f32.mrf.mxu2 }
  0x94   :  { %v78_v61 = vpop.permute.xlu0 %77  ;;  %v256_v10 = vadd.f32 %v255_v60, %v133_v50  ;;  %v693_v60 = vld [vmem:[%s1053_s4 + $0x38] sm:$0xff] }
  0x95   :  { %v228_v62 = vpop.f32.mrf.mxu0  ;;  %v83_v2 = vpop.permute.xlu1 %82 }
  0x96   :  { %v229_v1 = vadd.f32 %v228_v62, %v78_v61 }
  0x98   :  { %712 = vtanh.f32 %v229_v1 }
  0x9b   :  { %v258_v3 = vpop.f32.mrf.mxu2 }
  0x9c   :  { %v73_v4 = vpop.permute.xlu0 %72  ;;  %v259_v9 = vadd.f32 %v258_v3, %v138_v46 }
  0x9d   :  { %v230_v5 = vpop.f32.mrf.mxu0  ;;  %v226_v6 = vadd.f32 %v225_v58, %v73_v4  ;;  %v692_v58 = vld [vmem:[%s1053_s4 + $0x30] sm:$0xff] }
  0x9e   :  { %v231_v7 = vadd.f32 %v230_v5, %v83_v2  ;;  %v713_v14 = vpop.eup %712  ;;  %v392_v5 = vpop.permute.xlu1 %391 }
  0x9f   :  { %714 = vtanh.f32 %v226_v6 }
  0xa0   :  { %716 = vtanh.f32 %v231_v7  ;;  %v397_v7 = vpop.permute.xlu2 %396 }
  0xa1   :  { %718 = vtanh.f32 %v254_v8 }
  0xa2   :  { %720 = vtanh.f32 %v259_v9 }
  0xa3   :  { %v260_v11 = vpop.f32.mrf.mxu2  ;;  %722 = vtanh.f32 %v256_v10 }
  0xa4   :  { %v261_v13 = vadd.f32 %v260_v11, %v143_v49  ;;  %v382_v11 = vpop.permute.xlu0 %381 }
  0xa5   :  { %v233_v15 = vpop.f32.mrf.mxu0  ;;  %v715_v16 = vpop.eup %714 }
  0xa6   :  { %724 = vtanh.f32 %v261_v13  ;;  %v717_v17 = vpop.eup %716  ;;  %v295_v18 = vpack.c.bf16 %v715_v16, %v711_v12  ;;  %v234_v44 = vadd.f32 %v233_v15, %v996_v59  ;;  %v689_v59 = vld [vmem:[%s1053_s4 + $0x18] sm:$0xff]  ;;  %v387_v9 = vpop.permute.xlu1 %386 }
  0xa7   :  { %v296_v19 = vpack.c.bf16 %v717_v17, %v713_v14  ;;  %v719_v20 = vpop.eup %718 }
  0xa8   :  { %v721_v21 = vpop.eup %720  ;;  %v372_v12 = vpop.permute.xlu2 %371 }
  0xa9   :  { %v723_v22 = vpop.eup %722 }
  0xaa   :  { %v301_v26 = vpack.c.bf16 %v723_v22, %v719_v20 }
  0xac   :  { %v725_v23 = vpop.eup %724  ;;  %v377_v16 = vpop.permute.xlu0 %376 }
  0xad   :  { %v235_v24 = vpop.f32.mrf.mxu0  ;;  %v302_v25 = vpack.c.bf16 %v725_v23, %v721_v21 }
  0xae   :  { %v236_v41 = vadd.f32 %v235_v24, %v994_v56  ;;  %v691_v56 = vld [vmem:[%s1053_s4 + $0x28] sm:$0xff]  ;;  %v362_v15 = vpop.permute.xlu1 %361 }
  0xaf   :  { %447 = vmatpush.bf16.msra.mxu1 %v302_v25  ;;  %695 = vmatpush.bf16.msra.mxu3 %v302_v25 }
  0xb3   :  { %448 = vmatpush.bf16.msra.mxu1 %v301_v26  ;;  %696 = vmatpush.bf16.msra.mxu3 %v301_v26 }
  0xb4   :  { %v352_v26 = vpop.permute.xlu0 %351 }
  0xb5   :  { %v238_v27 = vpop.f32.mrf.mxu0 }
  0xb6   :  { %v239_v38 = vadd.f32 %v238_v27, %v992_v51  ;;  %v357_v24 = vpop.permute.xlu1 %356 }
  0xbd   :  { %v240_v28 = vpop.f32.mrf.mxu0 }
  0xbe   :  { %v241_v37 = vadd.f32 %v240_v28, %v103_v57  ;;  %v688_v57 = vld [vmem:[%s1053_s4 + $0x10] sm:$0xff] }
  0xc5   :  { %v243_v29 = vpop.f32.mrf.mxu0 }
  0xc6   :  { %v244_v36 = vadd.f32 %v243_v29, %v108_v52 }
  0xcd   :  { %v245_v30 = vpop.f32.mrf.mxu0 }
  0xce   :  { %v246_v34 = vadd.f32 %v245_v30, %v113_v54  ;;  %v690_v54 = vld [vmem:[%s1053_s4 + $0x20] sm:$0xff] }
  0xd5   :  { %v248_v31 = vpop.f32.mrf.mxu0 }
  0xd6   :  { %v249_v32 = vadd.f32 %v248_v31, %v988_v45 }
  0xd8   :  { %726 = vtanh.f32 %v249_v32 }
  0xdd   :  { %v250_v33 = vpop.f32.mrf.mxu0 }
  0xde   :  { %v251_v35 = vadd.f32 %v250_v33, %v990_v48  ;;  %v727_v39 = vpop.eup %726 }
  0xe0   :  { %728 = vtanh.f32 %v251_v35 }
  0xe1   :  { %730 = vtanh.f32 %v246_v34 }
  0xe2   :  { %732 = vtanh.f32 %v244_v36 }
  0xe3   :  { %734 = vtanh.f32 %v241_v37 }
  0xe4   :  { %736 = vtanh.f32 %v239_v38  ;;  %v332_v38 = vpop.permute.xlu1 %331 }
  0xe5   :  { %738 = vtanh.f32 %v236_v41 }
  0xe6   :  { %v729_v40 = vpop.eup %728  ;;  %740 = vtanh.f32 %v234_v44 }
  0xe7   :  { %v300_v42 = vpack.c.bf16 %v729_v40, %v727_v39  ;;  %v731_v43 = vpop.eup %730 }
  0xe8   :  { %v733_v45 = vpop.eup %732 }
  0xe9   :  { %449 = vmatpush.bf16.msra.mxu1 %v300_v42  ;;  %697 = vmatpush.bf16.msra.mxu3 %v300_v42  ;;  %v299_v46 = vpack.c.bf16 %v731_v43, %v733_v45  ;;  %v735_v47 = vpop.eup %734  ;;  %v347_v42 = vpop.permute.xlu0 %346 }
  0xea   :  { %v737_v48 = vpop.eup %736 }
  0xeb   :  { %v298_v49 = vpack.c.bf16 %v735_v47, %v737_v48  ;;  %v739_v50 = vpop.eup %738 }
  0xec   :  { %v741_v51 = vpop.eup %740 }
  0xed   :  { %450 = vmatpush.bf16.msra.mxu1 %v299_v46  ;;  %698 = vmatpush.bf16.msra.mxu3 %v299_v46  ;;  %v297_v52 = vpack.c.bf16 %v739_v50, %v741_v51 }
  0xf1   :  { %451 = vmatpush.bf16.msra.mxu1 %v298_v49  ;;  %699 = vmatpush.bf16.msra.mxu3 %v298_v49 }
  0xf5   :  { %452 = vmatpush.bf16.msra.mxu1 %v297_v52  ;;  %700 = vmatpush.bf16.msra.mxu3 %v297_v52 }
  0xf9   :  { %453 = vmatpush.bf16.msra.mxu1 %v296_v19  ;;  %701 = vmatpush.bf16.msra.mxu3 %v296_v19 }
  0xfd   :  { %454 = vmatpush.bf16.msra.mxu1 %v295_v18  ;;  %702 = vmatpush.bf16.msra.mxu3 %v295_v18  ;;  %v367_v18 = vpop.permute.xlu2 %366 }
 0x100   :  { %455 = vmatmul.bf16.vlgmr.msra.gmra.mxu1 %v686_v53  ;;  %475 = vmatmul.bf16.vlgmr.msra.gmra.mxu3 %v690_v54  ;;  %v327_v54 = vpop.permute.xlu1 %326 }
 0x105   :  { %v342_v31 = vpop.permute.xlu2 %341 }
 0x10d   :  { %v337_v48 = vpop.permute.xlu2 %336 }
 0x110   :  { %460 = vmatmul.bf16.gmra.mxu1 %v687_v55  ;;  %480 = vmatmul.bf16.gmra.mxu3 %v691_v56 }
 0x120   :  { %465 = vmatmul.bf16.gmra.mxu1 %v688_v57  ;;  %485 = vmatmul.bf16.gmra.mxu3 %v692_v58  ;;  %v322_v57 = vpop.permute.xlu0 %321 }
 0x130   :  { %470 = vmatmul.bf16.gmra.mxu1 %v689_v59  ;;  %490 = vmatmul.bf16.gmra.mxu3 %v693_v60 }
 0x17d   :  { %v1027_v61 = vpop.f32.mrf.mxu1 }
 0x17e   :  { %v457_v60 = vadd.f32 %v1027_v61, %v322_v57  ;;  %v525_v61 = vpop.permute.xlu2 %524 }
 0x183   :  { %v476_v62 = vpop.f32.mrf.mxu3 }
 0x184   :  { %v477_v35 = vadd.f32 %v476_v62, %v362_v15 }
 0x185   :  { %v1029_v63 = vpop.f32.mrf.mxu1 }
 0x186   :  { %v459_v56 = vadd.f32 %v1029_v63, %v327_v54 }
 0x18b   :  { %v478_v0 = vpop.f32.mrf.mxu3 }
 0x18c   :  { %v479_v30 = vadd.f32 %v478_v0, %v367_v18 }
 0x18d   :  { %v1031_v1 = vpop.f32.mrf.mxu1 }
 0x18e   :  { %v462_v53 = vadd.f32 %v1031_v1, %v332_v38 }
 0x193   :  { %v481_v2 = vpop.f32.mrf.mxu3 }
 0x194   :  { %v482_v27 = vadd.f32 %v481_v2, %v372_v12 }
 0x195   :  { %v463_v4 = vpop.f32.mrf.mxu1 }
 0x196   :  { %v464_v50 = vadd.f32 %v463_v4, %v337_v48 }
 0x19b   :  { %v483_v3 = vpop.f32.mrf.mxu3 }
 0x19c   :  { %v484_v25 = vadd.f32 %v483_v3, %v377_v16 }
 0x19d   :  { %v466_v8 = vpop.f32.mrf.mxu1 }
 0x19e   :  { %v467_v47 = vadd.f32 %v466_v8, %v342_v31 }
 0x1a3   :  { %v486_v6 = vpop.f32.mrf.mxu3 }
 0x1a4   :  { %v487_v23 = vadd.f32 %v486_v6, %v382_v11  ;;  %v512_v6 = vld [vmem:[%s1055_s6] sm:$0xf] }
 0x1a5   :  { %v468_v13 = vpop.f32.mrf.mxu1 }
 0x1a6   :  { %v469_v44 = vadd.f32 %v468_v13, %v347_v42 }
 0x1ab   :  { %v488_v10 = vpop.f32.mrf.mxu3 }
 0x1ac   :  { %v489_v21 = vadd.f32 %v488_v10, %v387_v9 }
 0x1ad   :  { %v471_v19 = vpop.f32.mrf.mxu1 }
 0x1ae   :  { %v472_v41 = vadd.f32 %v471_v19, %v352_v26 }
 0x1b3   :  { %v491_v14 = vpop.f32.mrf.mxu3 }
 0x1b4   :  { %v492_v17 = vadd.f32 %v491_v14, %v392_v5 }
 0x1b5   :  { %v473_v32 = vpop.f32.mrf.mxu1 }
 0x1b6   :  { %742 = vtanh.f32 %v492_v17  ;;  %v474_v37 = vadd.f32 %v473_v32, %v357_v24 }
 0x1bb   :  { %v493_v20 = vpop.f32.mrf.mxu3 }
 0x1bc   :  { %v494_v22 = vadd.f32 %v493_v20, %v397_v7  ;;  %v743_v28 = vpop.eup %742 }
 0x1be   :  { %744 = vtanh.f32 %v494_v22 }
 0x1bf   :  { %746 = vtanh.f32 %v489_v21 }
 0x1c0   :  { %748 = vtanh.f32 %v487_v23 }
 0x1c1   :  { %750 = vtanh.f32 %v484_v25  ;;  %v807_v25 = vmov 0.0  }
 0x1c2   :  { %752 = vtanh.f32 %v482_v27  ;;  %589 = vst [vmem:[#allocation2 + $0x5] sm:$0x7] %v807_v25 }
 0x1c3   :  { %754 = vtanh.f32 %v479_v30  ;;  %v709_v30 = vld [vmem:[%s1049_s0] ss:$0 sm:$0xff]  ;;  %s808_s0 = smov [#allocation2]  }
 0x1c4   :  { %v745_v29 = vpop.eup %744  ;;  %756 = vtanh.f32 %v477_v35  ;;  %s595_s10 = sshll.u32 %s808_s0, 4  ;;  %s596_s10 = int_to_ptr.vmem [resolvable:$true] %s595_s10 }
 0x1c5   :  { %v520_v33 = vpack.c.bf16 %v745_v29, %v743_v28  ;;  %v747_v34 = vpop.eup %746  ;;  %758 = vtanh.f32 %v474_v37  ;;  %v563_v28 = vlaneseq }
 0x1c6   :  { %v749_v36 = vpop.eup %748  ;;  %760 = vtanh.f32 %v472_v41 }
 0x1c7   :  { %527 = vmatpush.bf16.msrb.mxu2 %v520_v33  ;;  %v519_v39 = vpack.c.bf16 %v747_v34, %v749_v36  ;;  %v751_v40 = vpop.eup %750  ;;  %762 = vtanh.f32 %v469_v44  ;;  %v564_v29 = vshrl.u32 %v563_v28, 7 }
 0x1c8   :  { %v753_v43 = vpop.eup %752  ;;  %764 = vtanh.f32 %v467_v47 }
 0x1c9   :  { %v518_v45 = vpack.c.bf16 %v751_v40, %v753_v43  ;;  %v755_v46 = vpop.eup %754  ;;  %766 = vtanh.f32 %v464_v50  ;;  %vm567_vm3 = vcmp.eq.s32.totalorder %v564_v29, %v709_v30 }
 0x1ca   :  { %v757_v49 = vpop.eup %756  ;;  %768 = vtanh.f32 %v462_v53 }
 0x1cb   :  { %528 = vmatpush.bf16.msrb.mxu2 %v519_v39  ;;  %v517_v51 = vpack.c.bf16 %v755_v46, %v757_v49  ;;  %v759_v52 = vpop.eup %758  ;;  %770 = vtanh.f32 %v459_v56 }
 0x1cc   :  { %v761_v55 = vpop.eup %760  ;;  %772 = vtanh.f32 %v457_v60 }
 0x1cd   :  { %v516_v58 = vpack.c.bf16 %v759_v52, %v761_v55  ;;  %v763_v59 = vpop.eup %762 }
 0x1ce   :  { %v765_v62 = vpop.eup %764 }
 0x1cf   :  { %529 = vmatpush.bf16.msrb.mxu2 %v518_v45  ;;  %v515_v0 = vpack.c.bf16 %v763_v59, %v765_v62  ;;  %v767_v2 = vpop.eup %766 }
 0x1d0   :  { %v769_v1 = vpop.eup %768 }
 0x1d1   :  { %v514_v3 = vpack.c.bf16 %v767_v2, %v769_v1  ;;  %v771_v4 = vpop.eup %770 }
 0x1d2   :  { %v773_v5 = vpop.eup %772 }
 0x1d3   :  { %530 = vmatpush.bf16.msrb.mxu2 %v517_v51  ;;  %v513_v63 = vpack.c.bf16 %v771_v4, %v773_v5 }
 0x1d7   :  { %531 = vmatpush.bf16.msrb.mxu2 %v516_v58 }
 0x1db   :  { %532 = vmatpush.bf16.msrb.mxu2 %v515_v0 }
 0x1df   :  { %533 = vmatpush.bf16.msrb.mxu2 %v514_v3 }
 0x1e3   :  { %534 = vmatpush.bf16.msrb.mxu2 %v513_v63 }
 0x1e6   :  { %535 = vmatmul.bf16.vlgmr.msrb.gmra.mxu2 %v512_v6 }
 0x269   :  { %v536_v7 = vpop.f32.mrf.mxu2 }
 0x26a   :  { %v537_v8 = vadd.f32 %v536_v7, %v525_v61 }
 0x26c   :  { %v541_v9 = vsel %vm540_vm2, %v537_v8, -inf  ;;  %588 = vst [vmem:[#allocation2 + $0x2] sm:$0x4] %v537_v8 }
 0x26d   :  { %v542_v10 = vrot.slane %v541_v9, 4 }
 0x26f   :  { %v543_v11 = vmax.f32 %v541_v9, %v542_v10 }
 0x271   :  { %v544_v12 = vrot.slane %v543_v11, 2  ;;  %v538_v13 = vpop.f32.mrf.mxu2 }
 0x273   :  { %v545_v14 = vmax.f32 %v543_v11, %v544_v12 }
 0x275   :  { %v546_v15 = vrot.slane %v545_v14, 1 }
 0x277   :  { %v547_v16 = vmax.f32 %v545_v14, %v546_v15 }
 0x279   :  { %v548_v17 = vsub.f32 %v537_v8, %v547_v16 }
 0x27b   :  { %v549_v18 = vmul.f32 1.442695, %v548_v17 }
 0x27d   :  { %774 = vpow2.f32 %v549_v18 }
 0x283   :  { %v775_v19 = vpop.eup %774 }
 0x284   :  { %v551_v20 = vsel %vm540_vm2, %v775_v19, 0.0 }
 0x285   :  { %v552_v21 = vrot.slane %v551_v20, 4 }
 0x287   :  { %v553_v22 = vadd.f32 %v552_v21, %v551_v20 }
 0x289   :  { %v554_v23 = vrot.slane %v553_v22, 2 }
 0x28b   :  { %v555_v24 = vadd.f32 %v554_v23, %v553_v22 }
 0x28d   :  { %v556_v26 = vrot.slane %v555_v24, 1 }
 0x28f   :  { %v557_v27 = vadd.f32 %v556_v26, %v555_v24 }
 0x291   :  { %776 = vlog2.f32 %v557_v27 }
 0x292   :  { %778 = vrcp.f32 %v557_v27 }
 0x297   :  { %v777_v31 = vpop.eup %776 }
 0x298   :  { %v779_v32 = vpop.eup %778  ;;  %v559_v33 = vmul.f32 0.6931472, %v777_v31 }
 0x299   :  { %v561_v34 = vmul.f32 %v779_v32, %v775_v19 }
 0x29a   :  { %v562_v35 = vsub.f32 %v548_v17, %v559_v33 }
 0x29b   :  { %v576_v36 = vmul.f32 %v561_v34, %v548_v17  ;;  %585 = vst [vmem:[#allocation2] sm:$0x3] %v561_v34 }
 0x29c   :  { %v568_v37 = vsel %vm567_vm3, %v562_v35, 0.0 }
 0x29d   :  { %v569_v38 = vsel %vm540_vm2, %v568_v37, 0.0  ;;  %v577_v39 = vsel %vm540_vm2, %v576_v36, 0.0 }
 0x29e   :  { %v570_v40 = vrot.slane %v569_v38, 4  ;;  %v578_v41 = vrot.slane %v577_v39, 4 }
 0x2a0   :  { %v571_v42 = vadd.f32 %v570_v40, %v569_v38  ;;  %v579_v43 = vadd.f32 %v578_v41, %v577_v39 }
 0x2a2   :  { %v572_v44 = vrot.slane %v571_v42, 2  ;;  %v580_v45 = vrot.slane %v579_v43, 2 }
 0x2a4   :  { %v573_v46 = vadd.f32 %v572_v44, %v571_v42  ;;  %v581_v47 = vadd.f32 %v580_v45, %v579_v43 }
 0x2a6   :  { %v574_v48 = vrot.slane %v573_v46, 1  ;;  %v582_v49 = vrot.slane %v581_v47, 1 }
 0x2a8   :  { %v583_v50 = vadd.f32 %v582_v49, %v581_v47  ;;  %v575_v51 = vadd.f32 %v574_v48, %v573_v46 }
 0x2aa   :  { %v584_v52 = vsub.f32 %v559_v33, %v583_v50  ;;  %586 = vst [vmem:[#allocation2 + $0x2] sm:$0x1] %v575_v51 }
 0x2ac   :  { %587 = vst [vmem:[#allocation2 + $0x3] sm:$0x1] %v584_v52 }
 0x2ad   :  { %600 = dma.vmem_to_hbm [thread:$0]  %s596_s10, 128, %s598_s12, [#allocation3]  }
 0x2ae   :  { %804 = dma.done.wait [#allocation3], 128  }
 0x2af   :  { %805 = vsyncadd [#allocation3], 4294967168 }
 0x2b0   :  { %605 = vsyncpa [#allocation3], 1 }

</bundles_post_ra>
